<compile_context>
chip_gen: v6e
topology: v6e:2x2x1
jax: 0.10.0
libtpu: 0.0.40
codegen_flags: <defaults>
</compile_context>

<pallas_src>
from typing import NamedTuple, Optional

import jax
import jax.numpy as jnp
from jax import lax
from jax.experimental import pallas as pl
from jax.experimental.pallas import tpu as pltpu

_INT32_MAX = 2**31 - 1
# TODO(synk): torch returns int64 indices; int32 is used here (JAX TPU default).
_IDX_DTYPE = jnp.int32

_BLOCK_BUDGET = 2 * 1024 * 1024  # target bytes per input block (double-buffered)


class MinResult(NamedTuple):
    values: jax.Array
    indices: jax.Array


def _round_up(a: int, b: int) -> int:
    return (a + b - 1) // b * b


def _cdiv(a: int, b: int) -> int:
    return (a + b - 1) // b


def _sublane(dtype) -> int:
    # Minimal second-minor tile: 8 (f32) / 16 (bf16) / 32 (int8, bool).
    return max(8, 32 // jnp.dtype(dtype).itemsize)


def _pad_fill_value(dtype):
    dtype = jnp.dtype(dtype)
    if jnp.issubdtype(dtype, jnp.floating):
        return float("inf")
    if jnp.issubdtype(dtype, jnp.integer):
        return int(jnp.iinfo(dtype).max)
    if dtype == jnp.dtype(jnp.bool_):
        return True
    raise TypeError(f"Unsupported dtype for Min kernel: {dtype}")


def _divisor_tile(n: int, step: int, cap: int):
    """Largest multiple of `step` <= cap that divides n, else None."""
    cap = max(step, (cap // step) * step)
    t = cap
    while t >= step:
        if n % t == 0:
            return t
        t -= step
    return None


# ----------------------------------------------------------------------------
# Kernel 1: min + argmin over the last axis of a (R, K) slab.
# Grid: (row_tiles, k_tiles); k (reduction) is the last, "arbitrary" axis.
# (TR, 1) output blocks stay resident across k and accumulate values +
# first-occurrence indices.
# ----------------------------------------------------------------------------
def _min_lastdim_kernel(x_ref, vals_ref, idx_ref):
    k = pl.program_id(1)
    blk = x_ref[...]                                   # (TR, TK)
    tk = blk.shape[1]

    bmin = jnp.min(blk, axis=1, keepdims=True)         # (TR, 1)
    col = lax.broadcasted_iota(jnp.int32, blk.shape, 1) + k * tk
    hit = jnp.where(blk == bmin, col, jnp.int32(_INT32_MAX))
    bidx = jnp.min(hit, axis=1, keepdims=True)         # first occurrence

    @pl.when(k == 0)
    def _():
        vals_ref[...] = bmin
        idx_ref[...] = bidx

    @pl.when(k != 0)
    def _():
        cur_v = vals_ref[...]
        cur_i = idx_ref[...]
        better = bmin < cur_v                          # strict: keep first occurrence
        vals_ref[...] = jnp.where(better, bmin, cur_v)
        idx_ref[...] = jnp.where(better, bidx, cur_i)


def _min_lastdim_2d(x2d: jax.Array):
    """min/argmin over axis=-1 of a (R, K) array -> ((R,), (R,))."""
    R, K = x2d.shape
    dtype = x2d.dtype
    itemsize = jnp.dtype(dtype).itemsize
    sub = _sublane(dtype)

    # Reduction (lane) tiling: full K when it fits one block, else prefer a
    # 128-aligned divisor (no padding copy), else pad to 1024-wide tiles.
    if K <= 2048 or K * itemsize <= _BLOCK_BUDGET:
        TK, Kp = K, K
    else:
        t = _divisor_tile(K, 128, 2048)
        if t is not None:
            TK, Kp = t, K
        else:
            TK, Kp = 1024, _round_up(K, 1024)

    # Row (sublane) tiling.
    max_rows = max(sub, _BLOCK_BUDGET // max(1, TK * itemsize))
    if R <= max_rows:
        TR, Rp = R, R
    else:
        cap = min(max_rows, 4096)
        t = _divisor_tile(R, sub, cap)
        if t is not None:
            TR, Rp = t, R
        else:
            TR = max(sub, (cap // sub) * sub)
            Rp = _round_up(R, TR)

    if (Rp, Kp) != (R, K):
        fill = _pad_fill_value(dtype)
        x2d = jnp.pad(x2d, ((0, Rp - R), (0, Kp - K)), constant_values=fill)

    grid = (Rp // TR, Kp // TK)
    vals, idx = pl.pallas_call(
        _min_lastdim_kernel,
        out_shape=(
            jax.ShapeDtypeStruct((Rp, 1), dtype),
            jax.ShapeDtypeStruct((Rp, 1), _IDX_DTYPE),
        ),
        grid_spec=pltpu.PrefetchScalarGridSpec(
            num_scalar_prefetch=0,
            grid=grid,
            in_specs=[pl.BlockSpec((TR, TK), lambda i, k: (i, k))],
            out_specs=[
                pl.BlockSpec((TR, 1), lambda i, k: (i, 0)),
                pl.BlockSpec((TR, 1), lambda i, k: (i, 0)),
            ],
        ),
        compiler_params=pltpu.CompilerParams(
            dimension_semantics=("parallel", "arbitrary"),
            vmem_limit_bytes=32 * 1024 * 1024,
        ),
        cost_estimate=pl.CostEstimate(
            flops=2 * Rp * Kp,
            transcendentals=0,
            bytes_accessed=Rp * Kp * itemsize + Rp * (itemsize + 4),
        ),
    )(x2d)
    return vals[:R, 0], idx[:R, 0]


# ----------------------------------------------------------------------------
# Kernel 2: min + argmin over the MIDDLE axis of an (A, K, B) slab.
# Grid: (A_tiles, B_tiles, K_tiles); k (reduction) is last / "arbitrary".
# (TA, 1, TB) output blocks are lane-dense along B and stay resident across k.
# Avoids the HBM transpose a moveaxis-to-last strategy would need.
# ----------------------------------------------------------------------------
def _min_middim_kernel(x_ref, vals_ref, idx_ref):
    k = pl.program_id(2)
    blk = x_ref[...]                                   # (TA, TK, TB)
    tk = blk.shape[1]

    bmin = jnp.min(blk, axis=1, keepdims=True)         # (TA, 1, TB)
    row = lax.broadcasted_iota(jnp.int32, blk.shape, 1) + k * tk
    hit = jnp.where(blk == bmin, row, jnp.int32(_INT32_MAX))
    bidx = jnp.min(hit, axis=1, keepdims=True)         # first occurrence

    @pl.when(k == 0)
    def _():
        vals_ref[...] = bmin
        idx_ref[...] = bidx

    @pl.when(k != 0)
    def _():
        cur_v = vals_ref[...]
        cur_i = idx_ref[...]
        better = bmin < cur_v
        vals_ref[...] = jnp.where(better, bmin, cur_v)
        idx_ref[...] = jnp.where(better, bidx, cur_i)


def _min_middim_3d(x3d: jax.Array):
    """min/argmin over axis=1 of an (A, K, B) array -> ((A, B), (A, B))."""
    A, K, B = x3d.shape
    dtype = x3d.dtype
    itemsize = jnp.dtype(dtype).itemsize
    sub = _sublane(dtype)

    # Lane (B) tiling: full dim when small, else 128-aligned divisor, else pad.
    if B <= 512:
        TB, Bp = B, B
    else:
        t = _divisor_tile(B, 128, 512)
        if t is not None:
            TB, Bp = t, B
        else:
            TB, Bp = 512, _round_up(B, 512)

    # Reduction (sublane, K) tiling.
    max_k = max(sub, _BLOCK_BUDGET // max(1, TB * itemsize))
    if K <= max_k:
        TK, Kp = K, K
    else:
        cap = min(max_k, 4096)
        t = _divisor_tile(K, sub, cap)
        if t is not None:
            TK, Kp = t, K
        else:
            TK = max(sub, (cap // sub) * sub)
            Kp = _round_up(K, TK)

    # Batch (A) tiling: pack several A rows per block (fewer grid steps) but
    # only with a divisor of A — never pad the batch axis.
    ta_cap = max(1, min(1024, _BLOCK_BUDGET // max(1, TK * TB * itemsize)))
    if ta_cap >= A:
        TA = A
    else:
        TA = _divisor_tile(A, 1, ta_cap) or 1

    if (Kp, Bp) != (K, B):
        fill = _pad_fill_value(dtype)
        x3d = jnp.pad(x3d, ((0, 0), (0, Kp - K), (0, Bp - B)), constant_values=fill)

    grid = (A // TA, Bp // TB, Kp // TK)
    vals, idx = pl.pallas_call(
        _min_middim_kernel,
        out_shape=(
            jax.ShapeDtypeStruct((A, 1, Bp), dtype),
            jax.ShapeDtypeStruct((A, 1, Bp), _IDX_DTYPE),
        ),
        grid_spec=pltpu.PrefetchScalarGridSpec(
            num_scalar_prefetch=0,
            grid=grid,
            in_specs=[pl.BlockSpec((TA, TK, TB), lambda a, b, k: (a, k, b))],
            out_specs=[
                pl.BlockSpec((TA, 1, TB), lambda a, b, k: (a, 0, b)),
                pl.BlockSpec((TA, 1, TB), lambda a, b, k: (a, 0, b)),
            ],
        ),
        compiler_params=pltpu.CompilerParams(
            dimension_semantics=("parallel", "parallel", "arbitrary"),
            vmem_limit_bytes=32 * 1024 * 1024,
        ),
        cost_estimate=pl.CostEstimate(
            flops=2 * A * Kp * Bp,
            transcendentals=0,
            bytes_accessed=A * Kp * Bp * itemsize + A * Bp * (itemsize + 4),
        ),
    )(x3d)
    return vals[:, 0, :B], idx[:, 0, :B]


# ----------------------------------------------------------------------------
# Kernel 3: global min + flattened argmin over a lane-dense (Rp, C) slab.
# Grid: (row_tiles,) sequential ("arbitrary"); (1, 1) outputs accumulate.
# ----------------------------------------------------------------------------
def _min_global_kernel(x_ref, val_ref, idx_ref):
    r = pl.program_id(0)
    blk = x_ref[...]                                   # (TR, C)
    tr, c = blk.shape

    bmin = jnp.min(blk, axis=1, keepdims=True)
    bmin = jnp.min(bmin, axis=0, keepdims=True)        # (1, 1)

    row = lax.broadcasted_iota(jnp.int32, blk.shape, 0)
    col = lax.broadcasted_iota(jnp.int32, blk.shape, 1)
    flat = (row + r * tr) * c + col
    hit = jnp.where(blk == bmin, flat, jnp.int32(_INT32_MAX))
    bidx = jnp.min(jnp.min(hit, axis=1, keepdims=True), axis=0, keepdims=True)

    @pl.when(r == 0)
    def _():
        val_ref[...] = bmin
        idx_ref[...] = bidx

    @pl.when(r != 0)
    def _():
        cur_v = val_ref[...]
        better = bmin < cur_v
        val_ref[...] = jnp.where(better, bmin, cur_v)
        idx_ref[...] = jnp.where(better, bidx, idx_ref[...])


def _min_global(x: jax.Array):
    """Global min value + flattened argmin index (scalars)."""
    flat = x.reshape(-1)
    N = int(flat.shape[0])
    dtype = flat.dtype
    itemsize = jnp.dtype(dtype).itemsize
    sub = _sublane(dtype)

    # Lane width: full N when tiny (single block, no pad), else a 128-aligned
    # divisor of N, else 512 with a (<512-element) tail pad.
    if N <= 512:
        C = max(N, 1)
    else:
        t = _divisor_tile(N, 128, 512)
        C = t if t is not None else 512
    R = _cdiv(N, C)

    max_rows = max(sub, _BLOCK_BUDGET // max(1, C * itemsize))
    if R <= max_rows:
        TR, Rp = R, R
    else:
        cap = min(max_rows, 4096)
        t = _divisor_tile(R, sub, cap)
        if t is not None:
            TR, Rp = t, R
        else:
            TR = max(sub, (cap // sub) * sub)
            Rp = _round_up(R, TR)

    total = Rp * C
    if total != N:
        fill = _pad_fill_value(dtype)
        flat = jnp.pad(flat, (0, total - N), constant_values=fill)
    x2d = flat.reshape(Rp, C)

    val, idx = pl.pallas_call(
        _min_global_kernel,
        out_shape=(
            jax.ShapeDtypeStruct((1, 1), dtype),
            jax.ShapeDtypeStruct((1, 1), _IDX_DTYPE),
        ),
        grid_spec=pltpu.PrefetchScalarGridSpec(
            num_scalar_prefetch=0,
            grid=(Rp // TR,),
            in_specs=[pl.BlockSpec((TR, C), lambda r: (r, 0))],
            out_specs=[
                pl.BlockSpec((1, 1), lambda r: (0, 0)),
                pl.BlockSpec((1, 1), lambda r: (0, 0)),
            ],
        ),
        compiler_params=pltpu.CompilerParams(
            dimension_semantics=("arbitrary",),
            vmem_limit_bytes=32 * 1024 * 1024,
        ),
        cost_estimate=pl.CostEstimate(
            flops=2 * Rp * C,
            transcendentals=0,
            bytes_accessed=Rp * C * itemsize + itemsize + 4,
        ),
    )(x2d)
    return val[0, 0], idx[0, 0]


def _min_along_dim(x: jax.Array, dim: int, keepdim: bool):
    nd = x.ndim
    d = dim % nd
    K = x.shape[d]
    out_shape = x.shape[:d] + x.shape[d + 1:]

    if d == nd - 1:
        R = 1
        for s in out_shape:
            R *= s
        vals, idx = _min_lastdim_2d(x.reshape(R, K))
    else:
        A = 1
        for s in x.shape[:d]:
            A *= s
        B = 1
        for s in x.shape[d + 1:]:
            B *= s
        vals, idx = _min_middim_3d(x.reshape(A, K, B))

    values = vals.reshape(out_shape)
    indices = idx.reshape(out_shape)
    if keepdim:
        values = jnp.expand_dims(values, d)
        indices = jnp.expand_dims(indices, d)
    return values, indices


class Min:
    """JAX/Pallas equivalent of torchoutil's Min module."""

    def __init__(
        self,
        dim: Optional[int],
        return_values: bool = True,
        return_indices: Optional[bool] = None,
        keepdim: bool = False,
    ) -> None:
        if return_indices is None:
            return_indices = dim is not None
        if not return_values and not return_indices:
            raise ValueError(
                f"Invalid combinaison of arguments return_values={return_values!r} "
                f"and return_indices={return_indices!r}. (at least one of them must be True)"
            )
        if dim is None and keepdim:
            raise ValueError(
                f"Invalid combinaison of arguments dim={dim!r} and keepdim={keepdim!r}. "
                f"(expected dim is not None or keepdim=False)"
            )
        self.dim = dim
        self.return_values = return_values
        self.return_indices = return_indices
        self.keepdim = keepdim

    def __call__(self, x) -> object:
        x = jnp.asarray(x)
        if self.dim is None:
            values, indices = _min_global(x)
        else:
            values, indices = _min_along_dim(x, self.dim, self.keepdim)

        if self.return_values and self.return_indices:
            return MinResult(values=values, indices=indices)
        elif self.return_values:
            return values
        else:
            return indices


if __name__ == "__main__":
    key = jax.random.PRNGKey(0)
    x = jax.random.normal(key, (2, 4, 16, 16), dtype=jnp.float32)

    # Case 1: min over last dim -> values + indices (default return_indices=True).
    out = Min(dim=-1)(x)
    jax.block_until_ready(out.values)
    assert out.values.shape == (2, 4, 16) and out.indices.shape == (2, 4, 16)
    assert jnp.array_equal(out.values, jnp.min(x, axis=-1))
    assert jnp.array_equal(
        out.indices.astype(jnp.int32), jnp.argmin(x, axis=-1).astype(jnp.int32)
    )

    # Case 2: dim=1 (middle axis), keepdim=True, values only.
    v2 = Min(dim=1, return_values=True, return_indices=False, keepdim=True)(x)
    jax.block_until_ready(v2)
    assert v2.shape == (2, 1, 16, 16)
    assert jnp.array_equal(v2, jnp.min(x, axis=1, keepdims=True))

    # Case 3: dim=None -> global min value (default return_indices=False).
    v3 = Min(dim=None)(x)
    jax.block_until_ready(v3)
    assert v3.shape == ()
    assert jnp.array_equal(v3, jnp.min(x))

    # Case 4: dim=None, return values and flattened argmin index.
    out4 = Min(dim=None, return_indices=True)(x)
    jax.block_until_ready(out4.values)
    assert int(out4.indices) == int(jnp.argmin(x))
    assert jnp.array_equal(out4.values, x.reshape(-1)[int(out4.indices)])

    # Case 5: bf16 input, indices only along dim=2 (middle axis).
    xb = x.astype(jnp.bfloat16)
    i5 = Min(dim=2, return_values=False, return_indices=True)(xb)
    jax.block_until_ready(i5)
    assert jnp.array_equal(
        i5.astype(jnp.int32), jnp.argmin(xb, axis=2).astype(jnp.int32)
    )

    # Case 6: odd, non-aligned dims (3, 5, 7), dim=1 (full-dim blocks, no pad).
    y = jax.random.normal(jax.random.PRNGKey(1), (3, 5, 7), dtype=jnp.float32)
    out6 = Min(dim=1)(y)
    jax.block_until_ready(out6.values)
    assert jnp.array_equal(out6.values, jnp.min(y, axis=1))
    assert jnp.array_equal(
        out6.indices.astype(jnp.int32), jnp.argmin(y, axis=1).astype(jnp.int32)
    )

    # Case 7: odd total size, dim=None with indices.
    out7 = Min(dim=None, return_indices=True)(y)
    jax.block_until_ready(out7.values)
    assert int(out7.indices) == int(jnp.argmin(y))
    assert jnp.array_equal(out7.values, jnp.min(y))

    print("KERNEL_OK")
</pallas_src>

<mosaic_0001>
module attributes {stable_mosaic.version = 11 : i64} {
  func.func @_min_lastdim_kernel(%arg0: i32, %arg1: i32, %arg2: memref<128x16xf32, #tpu.memory_space<vmem>>, %arg3: memref<128x1xf32, #tpu.memory_space<vmem>>, %arg4: memref<128x1xi32, #tpu.memory_space<vmem>>) attributes {dimension_semantics = [#tpu.dimension_semantics<parallel>, #tpu.dimension_semantics<arbitrary>], iteration_bounds = array<i64: 1, 1>, scalar_prefetch = 0 : i64, scratch_operands = 0 : i64, tpu.core_type = #tpu.core_type<tc>, window_params = [{transform_indices = @transform_0, window_bounds = array<i64: 128, 16>}, {transform_indices = @transform_1, window_bounds = array<i64: 128, 1>}, {transform_indices = @transform_2, window_bounds = array<i64: 128, 1>}]} {
    %c0 = arith.constant 0 : index
    %c0_0 = arith.constant 0 : index
    %0 = vector.load %arg2[%c0, %c0_0] : memref<128x16xf32, #tpu.memory_space<vmem>>, vector<128x16xf32>
    %cst = arith.constant dense<0x7F800000> : vector<128xf32>
    %1 = vector.multi_reduction <minimumf>, %0, %cst [1] : vector<128x16xf32> to vector<128xf32>
    %2 = vector.shape_cast %1 : vector<128xf32> to vector<128x1xf32>
    %3 = tpu.iota {dimensions = array<i32: 1>} : vector<128x16xi32>
    %c16_i32 = arith.constant 16 : i32
    %4 = arith.muli %arg1, %c16_i32 : i32
    %5 = vector.broadcast %4 : i32 to vector<128x16xi32>
    %6 = arith.addi %3, %5 : vector<128x16xi32>
    %7 = vector.broadcast %2 : vector<128x1xf32> to vector<128x16xf32>
    %8 = arith.cmpf oeq, %0, %7 : vector<128x16xf32>
    %c2147483647_i32 = arith.constant 2147483647 : i32
    %9 = vector.broadcast %c2147483647_i32 : i32 to vector<128x16xi32>
    %10 = arith.select %8, %6, %9 : vector<128x16xi1>, vector<128x16xi32>
    %cst_1 = arith.constant dense<2147483647> : vector<128xi32>
    %11 = vector.multi_reduction <minsi>, %10, %cst_1 [1] : vector<128x16xi32> to vector<128xi32>
    %12 = vector.shape_cast %11 : vector<128xi32> to vector<128x1xi32>
    %c0_i32 = arith.constant 0 : i32
    %13 = arith.cmpi eq, %arg1, %c0_i32 : i32
    %14 = arith.extui %13 : i1 to i32
    %c0_i32_2 = arith.constant 0 : i32
    %15 = arith.cmpi ne, %14, %c0_i32_2 : i32
    scf.if %15 {
      %c0_5 = arith.constant 0 : index
      %c0_6 = arith.constant 0 : index
      %19 = vector.load %arg3[%c0_5, %c0_6] : memref<128x1xf32, #tpu.memory_space<vmem>>, vector<128x1xf32>
      tpu.vector_store %arg3[%c0_5, %c0_6], %2 {strides = array<i32>} : memref<128x1xf32, #tpu.memory_space<vmem>>, vector<128x1xf32>,
      %c0_7 = arith.constant 0 : index
      %c0_8 = arith.constant 0 : index
      %20 = vector.load %arg4[%c0_7, %c0_8] : memref<128x1xi32, #tpu.memory_space<vmem>>, vector<128x1xi32>
      tpu.vector_store %arg4[%c0_7, %c0_8], %12 {strides = array<i32>} : memref<128x1xi32, #tpu.memory_space<vmem>>, vector<128x1xi32>,
    } else {
    }
    %c0_i32_3 = arith.constant 0 : i32
    %16 = arith.cmpi ne, %arg1, %c0_i32_3 : i32
    %17 = arith.extui %16 : i1 to i32
    %c0_i32_4 = arith.constant 0 : i32
    %18 = arith.cmpi ne, %17, %c0_i32_4 : i32
    scf.if %18 {
      %c0_5 = arith.constant 0 : index
      %c0_6 = arith.constant 0 : index
      %19 = vector.load %arg3[%c0_5, %c0_6] : memref<128x1xf32, #tpu.memory_space<vmem>>, vector<128x1xf32>
      %c0_7 = arith.constant 0 : index
      %c0_8 = arith.constant 0 : index
      %20 = vector.load %arg4[%c0_7, %c0_8] : memref<128x1xi32, #tpu.memory_space<vmem>>, vector<128x1xi32>
      %21 = arith.cmpf olt, %2, %19 : vector<128x1xf32>
      %22 = arith.select %21, %2, %19 : vector<128x1xi1>, vector<128x1xf32>
      %c0_9 = arith.constant 0 : index
      %c0_10 = arith.constant 0 : index
      %23 = vector.load %arg3[%c0_9, %c0_10] : memref<128x1xf32, #tpu.memory_space<vmem>>, vector<128x1xf32>
      tpu.vector_store %arg3[%c0_9, %c0_10], %22 {strides = array<i32>} : memref<128x1xf32, #tpu.memory_space<vmem>>, vector<128x1xf32>,
      %24 = arith.select %21, %12, %20 : vector<128x1xi1>, vector<128x1xi32>
      %c0_11 = arith.constant 0 : index
      %c0_12 = arith.constant 0 : index
      %25 = vector.load %arg4[%c0_11, %c0_12] : memref<128x1xi32, #tpu.memory_space<vmem>>, vector<128x1xi32>
      tpu.vector_store %arg4[%c0_11, %c0_12], %24 {strides = array<i32>} : memref<128x1xi32, #tpu.memory_space<vmem>>, vector<128x1xi32>,
    } else {
    }
    return
  }
  func.func @transform_0(%arg0: i32, %arg1: i32) -> (i32, i32) {
    %c0_i32 = arith.constant 0 : i32
    return %arg0, %arg1 : i32, i32
  }
  func.func @transform_1(%arg0: i32, %arg1: i32) -> (i32, i32) {
    %c0_i32 = arith.constant 0 : i32
    %c0_i32_0 = arith.constant 0 : i32
    return %arg0, %c0_i32 : i32, i32
  }
  func.func @transform_2(%arg0: i32, %arg1: i32) -> (i32, i32) {
    %c0_i32 = arith.constant 0 : i32
    %c0_i32_0 = arith.constant 0 : i32
    return %arg0, %c0_i32 : i32, i32
  }
}

</mosaic_0001>

<bundles_post_ra>
// kernel: tpu_custom_call.1
= control target key start
LH: loop header
LB: loop body
LE: loop exit
PB: predicated region body
PF: predicated region fallthrough
CT: control target
= control target key end

     0   :  { %vm26_vm0 = vcmask 130048   ;;  %v75_v32 = vlaneseq  ;;  %vm356_vm1 = vcmask 7168   ;;  %s1003_s0 = inlined_call_operand.vmem [shape: f32[128,16], index: 0, kind: input, shape index: {}]   ;;  %s1004_s1 = inlined_call_operand.vmem [shape: f32[128,1], index: 1, kind: output, shape index: {0}]   ;;  %s1005_s2 = inlined_call_operand.vmem [shape: s32[128,1], index: 2, kind: output, shape index: {1}]  }
   0x1   :  { %v10_v0 = vld [vmem:[%s1003_s0] sm:$0xff]  ;;  %v12_v1 = vld [vmem:[%s1003_s0 + $0x10] sm:$0xff]  ;;  %v538_v2 = vld [vmem:[%s1003_s0 + $0x8] sm:$0xff] }
   0x2   :  { %v27_v3 = vsel %vm26_vm0, %v10_v0, inf  ;;  %v33_v4 = vsel %vm26_vm0, %v12_v1, inf  ;;  %v545_v5 = vld [vmem:[%s1003_s0 + $0x18] sm:$0xff]  ;;  %v30_v6 = vsel %vm26_vm0, %v538_v2, inf  ;;  %v554_v8 = vld [vmem:[%s1003_s0 + $0x20] sm:$0xff]  ;;  %v559_v9 = vld [vmem:[%s1003_s0 + $0x28] sm:$0xff] }
   0x3   :  { %28 = vmin.xlane.f32.xlu0 %v27_v3  ;;  %34 = vmin.xlane.f32.xlu1 %v33_v4  ;;  %v36_v7 = vsel %vm26_vm0, %v545_v5, inf  ;;  %v39_v10 = vsel %vm26_vm0, %v554_v8, inf  ;;  %v42_v11 = vsel %vm26_vm0, %v559_v9, inf  ;;  %v568_v12 = vld [vmem:[%s1003_s0 + $0x30] sm:$0xff]  ;;  %v573_v13 = vld [vmem:[%s1003_s0 + $0x38] sm:$0xff]  ;;  %v582_v16 = vld [vmem:[%s1003_s0 + $0x40] sm:$0xff] }
   0x4   :  { %v45_v14 = vsel %vm26_vm0, %v568_v12, inf  ;;  %v48_v15 = vsel %vm26_vm0, %v573_v13, inf  ;;  %v587_v17 = vld [vmem:[%s1003_s0 + $0x48] sm:$0xff]  ;;  %v51_v18 = vsel %vm26_vm0, %v582_v16, inf  ;;  %v596_v20 = vld [vmem:[%s1003_s0 + $0x50] sm:$0xff]  ;;  %v601_v21 = vld [vmem:[%s1003_s0 + $0x58] sm:$0xff] }
   0x5   :  { %v54_v19 = vsel %vm26_vm0, %v587_v17, inf  ;;  %v57_v22 = vsel %vm26_vm0, %v596_v20, inf  ;;  %v60_v23 = vsel %vm26_vm0, %v601_v21, inf  ;;  %v610_v24 = vld [vmem:[%s1003_s0 + $0x60] sm:$0xff]  ;;  %v615_v25 = vld [vmem:[%s1003_s0 + $0x68] sm:$0xff]  ;;  %v624_v28 = vld [vmem:[%s1003_s0 + $0x70] sm:$0xff] }
   0x6   :  { %v63_v26 = vsel %vm26_vm0, %v610_v24, inf  ;;  %v66_v27 = vsel %vm26_vm0, %v615_v25, inf  ;;  %v629_v29 = vld [vmem:[%s1003_s0 + $0x78] sm:$0xff]  ;;  %v69_v30 = vsel %vm26_vm0, %v624_v28, inf  ;;  %v635_v33 = vand.u32 127, %v75_v32 }
   0x7   :  { %31 = vmin.xlane.f32.xlu0 %v30_v6  ;;  %37 = vmin.xlane.f32.xlu1 %v36_v7  ;;  %v72_v31 = vsel %vm26_vm0, %v629_v29, inf }
   0xb   :  { %40 = vmin.xlane.f32.xlu0 %v39_v10  ;;  %43 = vmin.xlane.f32.xlu1 %v42_v11 }
   0xf   :  { %46 = vmin.xlane.f32.xlu0 %v45_v14  ;;  %49 = vmin.xlane.f32.xlu1 %v48_v15 }
  0x13   :  { %52 = vmin.xlane.f32.xlu0 %v51_v18  ;;  %55 = vmin.xlane.f32.xlu1 %v54_v19 }
  0x17   :  { %58 = vmin.xlane.f32.xlu0 %v57_v22  ;;  %61 = vmin.xlane.f32.xlu1 %v60_v23 }
  0x1b   :  { %64 = vmin.xlane.f32.xlu0 %v63_v26  ;;  %67 = vmin.xlane.f32.xlu1 %v66_v27 }
  0x1f   :  { %70 = vmin.xlane.f32.xlu0 %v69_v30  ;;  %73 = vmin.xlane.f32.xlu1 %v72_v31 }
  0x8c   :  { %v29_v34 = vpop.xlane.xlu0 %28  ;;  %v35_v35 = vpop.xlane.xlu1 %34 }
  0x8d   :  { %vm80_vm2 = vcmp.eq.f32.partialorder %v10_v0, %v29_v34  ;;  %357 = vst.msk [vmem:[%s1004_s1] sm:$0xff] %vm356_vm1, %v29_v34  ;;  %vm82_vm3 = vcmp.eq.f32.partialorder %v12_v1, %v35_v35  ;;  %359 = vst.msk [vmem:[%s1004_s1 + $0x10] sm:$0xff] %vm356_vm1, %v35_v35 }
  0x8e   :  { %v96_v36 = vsel %vm80_vm2, %v635_v33, 2147483647  ;;  %v98_v37 = vsel %vm82_vm3, %v635_v33, 2147483647 }
  0x8f   :  { %v648_v38 = vsel %vm26_vm0, %v96_v36, 2147483647  ;;  %v651_v39 = vsel %vm26_vm0, %v98_v37, 2147483647 }
  0x90   :  { %v32_v40 = vpop.xlane.xlu0 %31  ;;  %v38_v41 = vpop.xlane.xlu1 %37  ;;  %v114_v42 = vshra.s32 %v648_v38, 16  ;;  %v144_v43 = vshra.s32 %v651_v39, 16 }
  0x91   :  { %vm81_vm4 = vcmp.eq.f32.partialorder %v538_v2, %v32_v40  ;;  %358 = vst.msk [vmem:[%s1004_s1 + $0x8] sm:$0xff] %vm356_vm1, %v32_v40  ;;  %vm83_vm5 = vcmp.eq.f32.partialorder %v545_v5, %v38_v41  ;;  %360 = vst.msk [vmem:[%s1004_s1 + $0x18] sm:$0xff] %vm356_vm1, %v38_v41 }
  0x92   :  { %v97_v44 = vsel %vm81_vm4, %v635_v33, 2147483647  ;;  %v99_v45 = vsel %vm83_vm5, %v635_v33, 2147483647  ;;  %v667_v46 = vcvt.s32.f32 %v114_v42  ;;  %v676_v51 = vcvt.s32.f32 %v144_v43 }
  0x93   :  { %v670_v47 = vsel %vm26_vm0, %v97_v44, 2147483647  ;;  %v673_v48 = vsel %vm26_vm0, %v99_v45, 2147483647 }
  0x94   :  { %117 = vmin.xlane.f32.xlu0 %v667_v46  ;;  %v41_v49 = vpop.xlane.xlu0 %40  ;;  %v44_v50 = vpop.xlane.xlu1 %43  ;;  %v129_v52 = vshra.s32 %v670_v47, 16  ;;  %v159_v53 = vshra.s32 %v673_v48, 16 }
  0x95   :  { %vm84_vm6 = vcmp.eq.f32.partialorder %v554_v8, %v41_v49  ;;  %361 = vst.msk [vmem:[%s1004_s1 + $0x20] sm:$0xff] %vm356_vm1, %v41_v49  ;;  %vm85_vm7 = vcmp.eq.f32.partialorder %v559_v9, %v44_v50  ;;  %362 = vst.msk [vmem:[%s1004_s1 + $0x28] sm:$0xff] %vm356_vm1, %v44_v50 }
  0x96   :  { %v100_v54 = vsel %vm84_vm6, %v635_v33, 2147483647  ;;  %v101_v55 = vsel %vm85_vm7, %v635_v33, 2147483647  ;;  %v692_v56 = vcvt.s32.f32 %v129_v52  ;;  %v702_v61 = vcvt.s32.f32 %v159_v53 }
  0x97   :  { %v695_v57 = vsel %vm26_vm0, %v100_v54, 2147483647  ;;  %v698_v58 = vsel %vm26_vm0, %v101_v55, 2147483647 }
  0x98   :  { %147 = vmin.xlane.f32.xlu0 %v676_v51  ;;  %132 = vmin.xlane.f32.xlu1 %v692_v56  ;;  %v47_v59 = vpop.xlane.xlu0 %46  ;;  %v50_v60 = vpop.xlane.xlu1 %49  ;;  %v174_v62 = vshra.s32 %v695_v57, 16  ;;  %v189_v63 = vshra.s32 %v698_v58, 16 }
  0x99   :  { %vm86_vm8 = vcmp.eq.f32.partialorder %v568_v12, %v47_v59  ;;  %363 = vst.msk [vmem:[%s1004_s1 + $0x30] sm:$0xff] %vm356_vm1, %v47_v59  ;;  %vm87_vm9 = vcmp.eq.f32.partialorder %v573_v13, %v50_v60  ;;  %364 = vst.msk [vmem:[%s1004_s1 + $0x38] sm:$0xff] %vm356_vm1, %v50_v60  ;;  %v113_v59 = vand.u32 65535, %v648_v38  ;;  %v158_v38 = vand.u32 65535, %v673_v48 }
  0x9a   :  { %v102_v0 = vsel %vm86_vm8, %v635_v33, 2147483647  ;;  %v103_v1 = vsel %vm87_vm9, %v635_v33, 2147483647  ;;  %v718_v2 = vcvt.s32.f32 %v174_v62  ;;  %v728_v7 = vcvt.s32.f32 %v189_v63 }
  0x9b   :  { %v721_v3 = vsel %vm26_vm0, %v102_v0, 2147483647  ;;  %v724_v4 = vsel %vm26_vm0, %v103_v1, 2147483647  ;;  %v115_v62 = vcvt.s32.f32 %v113_v59  ;;  %v128_v63 = vand.u32 65535, %v670_v47 }
  0x9c   :  { %162 = vmin.xlane.f32.xlu1 %v702_v61  ;;  %177 = vmin.xlane.f32.xlu0 %v718_v2  ;;  %v53_v5 = vpop.xlane.xlu0 %52  ;;  %v56_v6 = vpop.xlane.xlu1 %55  ;;  %v204_v8 = vshra.s32 %v721_v3, 16  ;;  %v219_v9 = vshra.s32 %v724_v4, 16  ;;  %v143_v0 = vand.u32 65535, %v651_v39  ;;  %v188_v48 = vand.u32 65535, %v698_v58 }
  0x9d   :  { %vm88_vm10 = vcmp.eq.f32.partialorder %v582_v16, %v53_v5  ;;  %365 = vst.msk [vmem:[%s1004_s1 + $0x40] sm:$0xff] %vm356_vm1, %v53_v5  ;;  %vm89_vm11 = vcmp.eq.f32.partialorder %v587_v17, %v56_v6  ;;  %366 = vst.msk [vmem:[%s1004_s1 + $0x48] sm:$0xff] %vm356_vm1, %v56_v6  ;;  %v218_v58 = vand.u32 65535, %v724_v4 }
  0x9e   :  { %v104_v10 = vsel %vm88_vm10, %v635_v33, 2147483647  ;;  %v105_v11 = vsel %vm89_vm11, %v635_v33, 2147483647  ;;  %v744_v12 = vcvt.s32.f32 %v204_v8  ;;  %v754_v17 = vcvt.s32.f32 %v219_v9 }
  0x9f   :  { %v747_v13 = vsel %vm26_vm0, %v104_v10, 2147483647  ;;  %v750_v14 = vsel %vm26_vm0, %v105_v11, 2147483647  ;;  %v130_v8 = vcvt.s32.f32 %v128_v63  ;;  %v145_v9 = vcvt.s32.f32 %v143_v0 }
  0xa0   :  { %192 = vmin.xlane.f32.xlu1 %v728_v7  ;;  %207 = vmin.xlane.f32.xlu0 %v744_v12  ;;  %v59_v15 = vpop.xlane.xlu0 %58  ;;  %v62_v16 = vpop.xlane.xlu1 %61  ;;  %v234_v18 = vshra.s32 %v747_v13, 16  ;;  %v249_v19 = vshra.s32 %v750_v14, 16  ;;  %v173_v10 = vand.u32 65535, %v695_v57  ;;  %v203_v57 = vand.u32 65535, %v721_v3 }
  0xa1   :  { %vm90_vm12 = vcmp.eq.f32.partialorder %v596_v20, %v59_v15  ;;  %367 = vst.msk [vmem:[%s1004_s1 + $0x50] sm:$0xff] %vm356_vm1, %v59_v15  ;;  %vm91_vm13 = vcmp.eq.f32.partialorder %v601_v21, %v62_v16  ;;  %368 = vst.msk [vmem:[%s1004_s1 + $0x58] sm:$0xff] %vm356_vm1, %v62_v16  ;;  %v160_v15 = vcvt.s32.f32 %v158_v38  ;;  %v233_v3 = vand.u32 65535, %v747_v13 }
  0xa2   :  { %v106_v22 = vsel %vm90_vm12, %v635_v33, 2147483647  ;;  %v107_v23 = vsel %vm91_vm13, %v635_v33, 2147483647  ;;  %v770_v26 = vcvt.s32.f32 %v234_v18  ;;  %v780_v31 = vcvt.s32.f32 %v249_v19 }
  0xa3   :  { %v773_v20 = vsel %vm26_vm0, %v106_v22, 2147483647  ;;  %v776_v27 = vsel %vm26_vm0, %v107_v23, 2147483647  ;;  %v175_v16 = vcvt.s32.f32 %v173_v10  ;;  %v190_v22 = vcvt.s32.f32 %v188_v48 }
  0xa4   :  { %222 = vmin.xlane.f32.xlu1 %v754_v17  ;;  %237 = vmin.xlane.f32.xlu0 %v770_v26  ;;  %v65_v21 = vpop.xlane.xlu0 %64  ;;  %v68_v30 = vpop.xlane.xlu1 %67  ;;  %v264_v32 = vshra.s32 %v773_v20, 16  ;;  %v279_v34 = vshra.s32 %v776_v27, 16  ;;  %v205_v23 = vcvt.s32.f32 %v203_v57  ;;  %v248_v4 = vand.u32 65535, %v750_v14 }
  0xa5   :  { %vm92_vm14 = vcmp.eq.f32.partialorder %v610_v24, %v65_v21  ;;  %369 = vst.msk [vmem:[%s1004_s1 + $0x60] sm:$0xff] %vm356_vm1, %v65_v21  ;;  %vm93_vm15 = vcmp.eq.f32.partialorder %v615_v25, %v68_v30  ;;  %370 = vst.msk [vmem:[%s1004_s1 + $0x68] sm:$0xff] %vm356_vm1, %v68_v30  ;;  %v263_v13 = vand.u32 65535, %v773_v20  ;;  %v278_v14 = vand.u32 65535, %v776_v27 }
  0xa6   :  { %v108_v35 = vsel %vm92_vm14, %v635_v33, 2147483647  ;;  %v109_v36 = vsel %vm93_vm15, %v635_v33, 2147483647  ;;  %v796_v37 = vcvt.s32.f32 %v264_v32  ;;  %v806_v42 = vcvt.s32.f32 %v279_v34 }
  0xa7   :  { %v799_v24 = vsel %vm26_vm0, %v108_v35, 2147483647  ;;  %v802_v40 = vsel %vm26_vm0, %v109_v36, 2147483647  ;;  %v220_v32 = vcvt.s32.f32 %v218_v58  ;;  %v235_v34 = vcvt.s32.f32 %v233_v3 }
  0xa8   :  { %252 = vmin.xlane.f32.xlu1 %v780_v31  ;;  %267 = vmin.xlane.f32.xlu0 %v796_v37  ;;  %v71_v25 = vpop.xlane.xlu0 %70  ;;  %v74_v41 = vpop.xlane.xlu1 %73  ;;  %v294_v43 = vshra.s32 %v799_v24, 16  ;;  %v309_v44 = vshra.s32 %v802_v40, 16  ;;  %v293_v20 = vand.u32 65535, %v799_v24  ;;  %v308_v27 = vand.u32 65535, %v802_v40 }
  0xa9   :  { %vm94_vm2 = vcmp.eq.f32.partialorder %v624_v28, %v71_v25  ;;  %371 = vst.msk [vmem:[%s1004_s1 + $0x70] sm:$0xff] %vm356_vm1, %v71_v25  ;;  %vm95_vm3 = vcmp.eq.f32.partialorder %v629_v29, %v74_v41  ;;  %372 = vst.msk [vmem:[%s1004_s1 + $0x78] sm:$0xff] %vm356_vm1, %v74_v41  ;;  %v250_v25 = vcvt.s32.f32 %v248_v4  ;;  %v265_v41 = vcvt.s32.f32 %v263_v13 }
  0xaa   :  { %v110_v45 = vsel %vm94_vm2, %v635_v33, 2147483647  ;;  %v111_v49 = vsel %vm95_vm3, %v635_v33, 2147483647  ;;  %v822_v50 = vcvt.s32.f32 %v294_v43  ;;  %v832_v29 = vcvt.s32.f32 %v309_v44 }
  0xab   :  { %v825_v28 = vsel %vm26_vm0, %v110_v45, 2147483647  ;;  %v828_v52 = vsel %vm26_vm0, %v111_v49, 2147483647  ;;  %v280_v45 = vcvt.s32.f32 %v278_v14  ;;  %v295_v49 = vcvt.s32.f32 %v293_v20 }
  0xac   :  { %282 = vmin.xlane.f32.xlu1 %v806_v42  ;;  %297 = vmin.xlane.f32.xlu0 %v822_v50  ;;  %v324_v53 = vshra.s32 %v825_v28, 16  ;;  %v339_v54 = vshra.s32 %v828_v52, 16  ;;  %v323_v24 = vand.u32 65535, %v825_v28  ;;  %v310_v59 = vcvt.s32.f32 %v308_v27 }
  0xad   :  { %v338_v40 = vand.u32 65535, %v828_v52 }
  0xae   :  { %v836_v55 = vcvt.s32.f32 %v324_v53  ;;  %v840_v33 = vcvt.s32.f32 %v339_v54 }
  0xaf   :  { %v340_v63 = vcvt.s32.f32 %v338_v40 }
  0xb0   :  { %312 = vmin.xlane.f32.xlu1 %v832_v29  ;;  %327 = vmin.xlane.f32.xlu0 %v836_v55 }
  0xb4   :  { %342 = vmin.xlane.f32.xlu1 %v840_v33 }
 0x11d   :  { %v844_v60 = vpop.xlane.xlu0 %117 }
 0x11e   :  { %vm119_vm0 = vcmp.eq.f32.partialorder %v667_v46, %v844_v60  ;;  %v124_v52 = vcvt.f32.s32 %v844_v60 }
 0x11f   :  { %v120_v1 = vsel %vm119_vm0, %v115_v62, inf  ;;  %v325_v62 = vcvt.s32.f32 %v323_v24 }
 0x120   :  { %121 = vmin.xlane.f32.xlu0 %v120_v1 }
 0x121   :  { %v850_v5 = vpop.xlane.xlu1 %132  ;;  %v852_v6 = vpop.xlane.xlu0 %147 }
 0x122   :  { %vm134_vm4 = vcmp.eq.f32.partialorder %v692_v56, %v850_v5  ;;  %vm149_vm5 = vcmp.eq.f32.partialorder %v676_v51, %v852_v6  ;;  %v139_v1 = vcvt.f32.s32 %v850_v5 }
 0x123   :  { %v135_v39 = vsel %vm134_vm4, %v130_v8, inf  ;;  %v150_v46 = vsel %vm149_vm5, %v145_v9, inf  ;;  %v125_v8 = vshll.u32 %v124_v52, 16 }
 0x124   :  { %136 = vmin.xlane.f32.xlu1 %v135_v39  ;;  %151 = vmin.xlane.f32.xlu0 %v150_v46  ;;  %v140_v10 = vshll.u32 %v139_v1, 16 }
 0x125   :  { %v860_v47 = vpop.xlane.xlu1 %162  ;;  %v862_v11 = vpop.xlane.xlu0 %177 }
 0x126   :  { %vm164_vm6 = vcmp.eq.f32.partialorder %v702_v61, %v860_v47  ;;  %vm179_vm7 = vcmp.eq.f32.partialorder %v718_v2, %v862_v11  ;;  %v169_v39 = vcvt.f32.s32 %v860_v47 }
 0x127   :  { %v165_v51 = vsel %vm164_vm6, %v160_v15, inf  ;;  %v180_v56 = vsel %vm179_vm7, %v175_v16, inf }
 0x128   :  { %166 = vmin.xlane.f32.xlu1 %v165_v51  ;;  %181 = vmin.xlane.f32.xlu0 %v180_v56 }
 0x129   :  { %v870_v18 = vpop.xlane.xlu1 %192  ;;  %v872_v19 = vpop.xlane.xlu0 %207 }
 0x12a   :  { %vm194_vm8 = vcmp.eq.f32.partialorder %v728_v7, %v870_v18  ;;  %vm209_vm9 = vcmp.eq.f32.partialorder %v744_v12, %v872_v19  ;;  %v199_v51 = vcvt.f32.s32 %v870_v18 }
 0x12b   :  { %v195_v61 = vsel %vm194_vm8, %v190_v22, inf  ;;  %v210_v2 = vsel %vm209_vm9, %v205_v23, inf  ;;  %v214_v23 = vcvt.f32.s32 %v872_v19 }
 0x12c   :  { %196 = vmin.xlane.f32.xlu1 %v195_v61  ;;  %211 = vmin.xlane.f32.xlu0 %v210_v2  ;;  %v200_v18 = vshll.u32 %v199_v51, 16 }
 0x12d   :  { %v880_v21 = vpop.xlane.xlu1 %222  ;;  %v882_v30 = vpop.xlane.xlu0 %237  ;;  %v215_v19 = vshll.u32 %v214_v23, 16 }
 0x12e   :  { %vm224_vm10 = vcmp.eq.f32.partialorder %v754_v17, %v880_v21  ;;  %vm239_vm11 = vcmp.eq.f32.partialorder %v770_v26, %v882_v30  ;;  %v229_v2 = vcvt.f32.s32 %v880_v21  ;;  %v244_v4 = vcvt.f32.s32 %v882_v30 }
 0x12f   :  { %v225_v7 = vsel %vm224_vm10, %v220_v32, inf  ;;  %v240_v12 = vsel %vm239_vm11, %v235_v34, inf }
 0x130   :  { %226 = vmin.xlane.f32.xlu1 %v225_v7  ;;  %241 = vmin.xlane.f32.xlu0 %v240_v12  ;;  %v230_v21 = vshll.u32 %v229_v2, 16  ;;  %v245_v30 = vshll.u32 %v244_v4, 16 }
 0x131   :  { %v890_v35 = vpop.xlane.xlu1 %252  ;;  %v892_v36 = vpop.xlane.xlu0 %267 }
 0x132   :  { %vm254_vm12 = vcmp.eq.f32.partialorder %v780_v31, %v890_v35  ;;  %vm269_vm13 = vcmp.eq.f32.partialorder %v796_v37, %v892_v36 }
 0x133   :  { %v255_v17 = vsel %vm254_vm12, %v250_v25, inf  ;;  %v270_v26 = vsel %vm269_vm13, %v265_v41, inf  ;;  %v259_v41 = vcvt.f32.s32 %v890_v35 }
 0x134   :  { %256 = vmin.xlane.f32.xlu1 %v255_v17  ;;  %271 = vmin.xlane.f32.xlu0 %v270_v26  ;;  %v274_v17 = vcvt.f32.s32 %v892_v36 }
 0x135   :  { %v900_v43 = vpop.xlane.xlu1 %282  ;;  %v902_v44 = vpop.xlane.xlu0 %297  ;;  %v260_v35 = vshll.u32 %v259_v41, 16 }
 0x136   :  { %vm284_vm14 = vcmp.eq.f32.partialorder %v806_v42, %v900_v43  ;;  %vm299_vm15 = vcmp.eq.f32.partialorder %v822_v50, %v902_v44  ;;  %v289_v24 = vcvt.f32.s32 %v900_v43  ;;  %v275_v36 = vshll.u32 %v274_v17, 16 }
 0x137   :  { %v285_v31 = vsel %vm284_vm14, %v280_v45, inf  ;;  %v300_v37 = vsel %vm299_vm15, %v295_v49, inf }
 0x138   :  { %286 = vmin.xlane.f32.xlu1 %v285_v31  ;;  %301 = vmin.xlane.f32.xlu0 %v300_v37  ;;  %v290_v43 = vshll.u32 %v289_v24, 16 }
 0x139   :  { %v910_v53 = vpop.xlane.xlu1 %312  ;;  %v912_v54 = vpop.xlane.xlu0 %327 }
 0x13a   :  { %vm314_vm2 = vcmp.eq.f32.partialorder %v832_v29, %v910_v53  ;;  %vm329_vm3 = vcmp.eq.f32.partialorder %v836_v55, %v912_v54  ;;  %v154_v55 = vcvt.f32.s32 %v852_v6  ;;  %v170_v6 = vshll.u32 %v169_v39, 16 }
 0x13b   :  { %v315_v42 = vsel %vm314_vm2, %v310_v59, inf  ;;  %v330_v50 = vsel %vm329_vm3, %v325_v62, inf  ;;  %v304_v59 = vcvt.f32.s32 %v902_v44  ;;  %v334_v1 = vcvt.f32.s32 %v912_v54 }
 0x13c   :  { %316 = vmin.xlane.f32.xlu1 %v315_v42  ;;  %331 = vmin.xlane.f32.xlu0 %v330_v50  ;;  %v155_v16 = vshll.u32 %v154_v55, 16 }
 0x13d   :  { %v919_v28 = vpop.xlane.xlu1 %342  ;;  %v305_v44 = vshll.u32 %v304_v59, 16  ;;  %v335_v39 = vshll.u32 %v334_v1, 16 }
 0x13e   :  { %vm344_vm0 = vcmp.eq.f32.partialorder %v840_v33, %v919_v28  ;;  %v184_v33 = vcvt.f32.s32 %v862_v11  ;;  %v349_v54 = vcvt.f32.s32 %v919_v28 }
 0x13f   :  { %v345_v0 = vsel %vm344_vm0, %v340_v63, inf  ;;  %v319_v63 = vcvt.f32.s32 %v910_v53 }
 0x140   :  { %346 = vmin.xlane.f32.xlu1 %v345_v0  ;;  %v185_v47 = vshll.u32 %v184_v33, 16 }
 0x141   :  { %v320_v53 = vshll.u32 %v319_v63, 16 }
 0x1a9   :  { %v122_v29 = vpop.xlane.xlu0 %121 }
 0x1aa   :  { %v123_v9 = vcvt.f32.s32 %v122_v29 }
 0x1ac   :  { %v126_v38 = vadd.s32 %v125_v8, %v123_v9 }
 0x1ad   :  { %v137_v46 = vpop.xlane.xlu1 %136  ;;  %v152_v15 = vpop.xlane.xlu0 %151 }
 0x1ae   :  { %373 = vst.msk [vmem:[%s1005_s2] sm:$0xff] %vm356_vm1, %v126_v38  ;;  %v138_v60 = vcvt.f32.s32 %v137_v46  ;;  %v153_v5 = vcvt.f32.s32 %v152_v15 }
 0x1b0   :  { %v141_v48 = vadd.s32 %v140_v10, %v138_v60  ;;  %v156_v57 = vadd.s32 %v155_v16, %v153_v5  ;;  %v350_v5 = vshll.u32 %v349_v54, 16 }
 0x1b1   :  { %v167_v56 = vpop.xlane.xlu1 %166  ;;  %v182_v22 = vpop.xlane.xlu0 %181 }
 0x1b2   :  { %374 = vst.msk [vmem:[%s1005_s2 + $0x8] sm:$0xff] %vm356_vm1, %v141_v48  ;;  %375 = vst.msk [vmem:[%s1005_s2 + $0x10] sm:$0xff] %vm356_vm1, %v156_v57  ;;  %v168_v11 = vcvt.f32.s32 %v167_v56  ;;  %v183_v58 = vcvt.f32.s32 %v182_v22 }
 0x1b4   :  { %v171_v3 = vadd.s32 %v170_v6, %v168_v11  ;;  %v186_v61 = vadd.s32 %v185_v47, %v183_v58 }
 0x1b5   :  { %v197_v32 = vpop.xlane.xlu1 %196  ;;  %v212_v34 = vpop.xlane.xlu0 %211 }
 0x1b6   :  { %376 = vst.msk [vmem:[%s1005_s2 + $0x18] sm:$0xff] %vm356_vm1, %v171_v3  ;;  %377 = vst.msk [vmem:[%s1005_s2 + $0x20] sm:$0xff] %vm356_vm1, %v186_v61  ;;  %v198_v13 = vcvt.f32.s32 %v197_v32  ;;  %v213_v7 = vcvt.f32.s32 %v212_v34 }
 0x1b8   :  { %v201_v12 = vadd.s32 %v200_v18, %v198_v13  ;;  %v216_v25 = vadd.s32 %v215_v19, %v213_v7 }
 0x1b9   :  { %v227_v14 = vpop.xlane.xlu1 %226  ;;  %v242_v20 = vpop.xlane.xlu0 %241 }
 0x1ba   :  { %378 = vst.msk [vmem:[%s1005_s2 + $0x28] sm:$0xff] %vm356_vm1, %v201_v12  ;;  %379 = vst.msk [vmem:[%s1005_s2 + $0x30] sm:$0xff] %vm356_vm1, %v216_v25  ;;  %v228_v26 = vcvt.f32.s32 %v227_v14  ;;  %v243_v45 = vcvt.f32.s32 %v242_v20 }
 0x1bc   :  { %v231_v49 = vadd.s32 %v230_v21, %v228_v26  ;;  %v246_v27 = vadd.s32 %v245_v30, %v243_v45 }
 0x1bd   :  { %v257_v31 = vpop.xlane.xlu1 %256  ;;  %v272_v37 = vpop.xlane.xlu0 %271 }
 0x1be   :  { %380 = vst.msk [vmem:[%s1005_s2 + $0x38] sm:$0xff] %vm356_vm1, %v231_v49  ;;  %381 = vst.msk [vmem:[%s1005_s2 + $0x40] sm:$0xff] %vm356_vm1, %v246_v27  ;;  %v258_v62 = vcvt.f32.s32 %v257_v31  ;;  %v273_v40 = vcvt.f32.s32 %v272_v37 }
 0x1c0   :  { %v261_v42 = vadd.s32 %v260_v35, %v258_v62  ;;  %v276_v50 = vadd.s32 %v275_v36, %v273_v40 }
 0x1c1   :  { %v287_v0 = vpop.xlane.xlu1 %286  ;;  %v302_v52 = vpop.xlane.xlu0 %301 }
 0x1c2   :  { %382 = vst.msk [vmem:[%s1005_s2 + $0x48] sm:$0xff] %vm356_vm1, %v261_v42  ;;  %383 = vst.msk [vmem:[%s1005_s2 + $0x50] sm:$0xff] %vm356_vm1, %v276_v50  ;;  %v288_v29 = vcvt.f32.s32 %v287_v0  ;;  %v303_v8 = vcvt.f32.s32 %v302_v52 }
 0x1c4   :  { %v291_v55 = vadd.s32 %v290_v43, %v288_v29  ;;  %v306_v9 = vadd.s32 %v305_v44, %v303_v8 }
 0x1c5   :  { %v317_v38 = vpop.xlane.xlu1 %316  ;;  %v332_v10 = vpop.xlane.xlu0 %331 }
 0x1c6   :  { %384 = vst.msk [vmem:[%s1005_s2 + $0x58] sm:$0xff] %vm356_vm1, %v291_v55  ;;  %385 = vst.msk [vmem:[%s1005_s2 + $0x60] sm:$0xff] %vm356_vm1, %v306_v9  ;;  %v318_v46 = vcvt.f32.s32 %v317_v38  ;;  %v333_v15 = vcvt.f32.s32 %v332_v10 }
 0x1c8   :  { %v321_v16 = vadd.s32 %v320_v53, %v318_v46  ;;  %v336_v33 = vadd.s32 %v335_v39, %v333_v15 }
 0x1c9   :  { %v347_v60 = vpop.xlane.xlu1 %346 }
 0x1ca   :  { %386 = vst.msk [vmem:[%s1005_s2 + $0x68] sm:$0xff] %vm356_vm1, %v321_v16  ;;  %387 = vst.msk [vmem:[%s1005_s2 + $0x70] sm:$0xff] %vm356_vm1, %v336_v33  ;;  %v348_v28 = vcvt.f32.s32 %v347_v60 }
 0x1cc   :  { %v351_v48 = vadd.s32 %v350_v5, %v348_v28 }
 0x1ce   :  { %388 = vst.msk [vmem:[%s1005_s2 + $0x78] sm:$0xff] %vm356_vm1, %v351_v48 }

</bundles_post_ra>
